<compile_context>
chip_gen: v5e
topology: v5e:2x2
jax: 0.10.0
libtpu: 0.0.40
codegen_flags: <defaults>
</compile_context>

<pallas_src>
import jax
import jax.numpy as jnp
from jax.experimental import pallas as pl
from jax.experimental.pallas import tpu as pltpu


def _hamiltonian_kernel(p_ref, q_ref, wp_ref, wq_ref, wd_ref,
                        segf_ref, segd_ref, out_ref):
    # p_ref, q_ref : (TILE_ROWS, W) f32, streamed over the batch grid.
    # wp_ref       : (1, W)   kinetic weights        0.5 / m[j]
    # wq_ref       : (1, W)   boundary-spring weights (nonzero only at j=0, N-1)
    # wd_ref       : (1, W-1) interior-spring weights 0.5 * k[j+1] (0 at sample edges)
    # segf_ref     : (W,   R) {0,1} segment matrix (lane -> sample within packed row)
    # segd_ref     : (W-1, R) same, truncated to the diff width
    # out_ref      : (TILE_ROWS, R)
    p = p_ref[...]
    q = q_ref[...]

    # Kinetic + boundary terms, elementwise on lane-dense vregs.
    t_pq = p * p * wp_ref[...] + q * q * wq_ref[...]          # (TR, W)

    # Neighbour difference along lanes.  Lanes where the "neighbour" belongs to
    # the next packed sample are multiplied by a zero weight, so their value is
    # irrelevant (no masking needed).
    d = q[:, :-1] - q[:, 1:]                                   # (TR, W-1)
    t_d = d * d * wd_ref[...]                                  # (TR, W-1)

    # Segmented lane reduction (groups of N lanes -> one sum per sample) done on
    # the otherwise idle MXU.  The segment matrices are exactly {0,1}; HIGHEST
    # precision keeps the f32 values un-truncated.
    h = (jnp.dot(t_pq, segf_ref[...],
                 precision=jax.lax.Precision.HIGHEST,
                 preferred_element_type=jnp.float32)
         + jnp.dot(t_d, segd_ref[...],
                   precision=jax.lax.Precision.HIGHEST,
                   preferred_element_type=jnp.float32))        # (TR, R)
    out_ref[...] = h.astype(out_ref.dtype)


def _round_up(x, m):
    return ((x + m - 1) // m) * m


def spr_chain_hamilt(p_vec, q_vec, k, m, *, max_tile_rows=1024):
    """p_vec, q_vec: (B, N); k: (N+1,); m: (N,). Returns H of shape (B,)."""
    B, N = p_vec.shape
    assert q_vec.shape == (B, N)
    assert k.shape == (N + 1,)
    assert m.shape == (N,)

    # Pack R samples per lane-row so the streamed blocks use (almost) all 128
    # lanes.  The reshape preserves row-major order, so it is free; padding is
    # only paid when B is not a multiple of 8*R (it is zero-filled -> H=0 rows
    # that get sliced off).
    R = max(1, 128 // N)
    W = R * N
    granule = 8 * R                       # keep the packed row count 8-aligned
    b_pad = _round_up(B, granule)
    rows = b_pad // R                     # multiple of 8

    def pack(x):
        x = x.astype(jnp.float32)
        if b_pad != B:
            x = jnp.pad(x, ((0, b_pad - B), (0, 0)))
        return x.reshape(rows, W)

    p_pk = pack(p_vec)
    q_pk = pack(q_vec)

    # Per-site weights, tiled across the R packed samples (tiny, grid-resident).
    kf = k.astype(jnp.float32)
    mf = m.astype(jnp.float32)
    wp_site = 0.5 / mf
    wq_site = jnp.zeros((N,), jnp.float32)
    wq_site = wq_site.at[0].add(0.5 * kf[0]).at[N - 1].add(0.5 * kf[N])
    wd_site = jnp.zeros((N,), jnp.float32)
    if N > 1:
        wd_site = wd_site.at[: N - 1].set(0.5 * kf[1:N])

    wp = jnp.tile(wp_site, R).reshape(1, W)
    wq = jnp.tile(wq_site, R).reshape(1, W)
    wd = jnp.tile(wd_site, R)[: W - 1].reshape(1, W - 1)

    lane_group = jnp.arange(W, dtype=jnp.int32) // N
    seg_full = (lane_group[:, None]
                == jnp.arange(R, dtype=jnp.int32)[None, :]).astype(jnp.float32)
    seg_diff = seg_full[: W - 1, :]

    tile_rows = min(max_tile_rows, rows)          # both are multiples of 8
    grid = (pl.cdiv(rows, tile_rows),)            # partial last block is masked

    out = pl.pallas_call(
        _hamiltonian_kernel,
        out_shape=jax.ShapeDtypeStruct((rows, R), jnp.float32),
        grid=grid,
        in_specs=[
            pl.BlockSpec((tile_rows, W), lambda i: (i, 0)),      # p  (streamed)
            pl.BlockSpec((tile_rows, W), lambda i: (i, 0)),      # q  (streamed)
            pl.BlockSpec((1, W), lambda i: (0, 0)),              # wp (resident)
            pl.BlockSpec((1, W), lambda i: (0, 0)),              # wq (resident)
            pl.BlockSpec((1, W - 1), lambda i: (0, 0)),          # wd (resident)
            pl.BlockSpec((W, R), lambda i: (0, 0)),              # seg_full
            pl.BlockSpec((W - 1, R), lambda i: (0, 0)),          # seg_diff
        ],
        out_specs=pl.BlockSpec((tile_rows, R), lambda i: (i, 0)),
        compiler_params=pltpu.CompilerParams(
            dimension_semantics=("parallel",),
        ),
    )(p_pk, q_pk, wp, wq, wd, seg_full, seg_diff)

    # (rows, R) row-major flatten == original batch order.
    return out.reshape(-1)[:B].astype(p_vec.dtype)


def _reference(p, q, k, m):
    kinetic = 0.5 * jnp.sum(p ** 2 / m, axis=1)
    q_diff = q[:, :-1] - q[:, 1:]
    potential = (0.5 * jnp.sum(k[1:-1] * q_diff ** 2, axis=1)
                 + 0.5 * k[0] * q[:, 0] ** 2
                 + 0.5 * k[-1] * q[:, -1] ** 2)
    return kinetic + potential


if __name__ == "__main__":
    key = jax.random.PRNGKey(0)
    B, N = 4, 16
    kp, kq = jax.random.split(key, 2)

    p_vec = jax.random.normal(kp, (B, N), dtype=jnp.float32)
    q_vec = jax.random.normal(kq, (B, N), dtype=jnp.float32)
    # Deterministic positive spring constants / masses.
    k_param = 1.0 + 0.1 * jnp.arange(N + 1, dtype=jnp.float32)
    m_param = 0.5 + 0.05 * jnp.arange(N, dtype=jnp.float32)

    out = spr_chain_hamilt(p_vec, q_vec, k_param, m_param)
    out = jax.block_until_ready(out)

    ref = _reference(p_vec, q_vec, k_param, m_param)
    assert out.shape == (B,)
    assert jnp.allclose(out, ref, rtol=1e-4, atol=1e-4), (out, ref)

    print("KERNEL_OK")
</pallas_src>

<mosaic_0001>
module attributes {stable_mosaic.version = 11 : i64} {
  func.func @_hamiltonian_kernel(%arg0: i32, %arg1: memref<8x128xf32, #tpu.memory_space<vmem>>, %arg2: memref<8x128xf32, #tpu.memory_space<vmem>>, %arg3: memref<1x128xf32, #tpu.memory_space<vmem>>, %arg4: memref<1x128xf32, #tpu.memory_space<vmem>>, %arg5: memref<1x127xf32, #tpu.memory_space<vmem>>, %arg6: memref<128x8xf32, #tpu.memory_space<vmem>>, %arg7: memref<127x8xf32, #tpu.memory_space<vmem>>, %arg8: memref<8x8xf32, #tpu.memory_space<vmem>>) attributes {dimension_semantics = [#tpu.dimension_semantics<parallel>], iteration_bounds = array<i64: 1>, scalar_prefetch = 0 : i64, scratch_operands = 0 : i64, tpu.core_type = #tpu.core_type<tc>, window_params = [{transform_indices = @transform_0, window_bounds = array<i64: 8, 128>}, {transform_indices = @transform_1, window_bounds = array<i64: 8, 128>}, {pipeline_mode = #tpu.pipeline_mode<synchronous>, transform_indices = @transform_2, window_bounds = array<i64: 1, 128>}, {pipeline_mode = #tpu.pipeline_mode<synchronous>, transform_indices = @transform_3, window_bounds = array<i64: 1, 128>}, {pipeline_mode = #tpu.pipeline_mode<synchronous>, transform_indices = @transform_4, window_bounds = array<i64: 1, 127>}, {pipeline_mode = #tpu.pipeline_mode<synchronous>, transform_indices = @transform_5, window_bounds = array<i64: 128, 8>}, {pipeline_mode = #tpu.pipeline_mode<synchronous>, transform_indices = @transform_6, window_bounds = array<i64: 127, 8>}, {transform_indices = @transform_7, window_bounds = array<i64: 8, 8>}]} {
    %c0 = arith.constant 0 : index
    %c0_0 = arith.constant 0 : index
    %0 = vector.load %arg1[%c0, %c0_0] : memref<8x128xf32, #tpu.memory_space<vmem>>, vector<8x128xf32>
    %c0_1 = arith.constant 0 : index
    %c0_2 = arith.constant 0 : index
    %1 = vector.load %arg2[%c0_1, %c0_2] : memref<8x128xf32, #tpu.memory_space<vmem>>, vector<8x128xf32>
    %2 = arith.mulf %0, %0 : vector<8x128xf32>
    %c0_3 = arith.constant 0 : index
    %c0_4 = arith.constant 0 : index
    %3 = vector.load %arg3[%c0_3, %c0_4] : memref<1x128xf32, #tpu.memory_space<vmem>>, vector<1x128xf32>
    %4 = vector.broadcast %3 : vector<1x128xf32> to vector<8x128xf32>
    %5 = arith.mulf %2, %4 : vector<8x128xf32>
    %6 = arith.mulf %1, %1 : vector<8x128xf32>
    %c0_5 = arith.constant 0 : index
    %c0_6 = arith.constant 0 : index
    %7 = vector.load %arg4[%c0_5, %c0_6] : memref<1x128xf32, #tpu.memory_space<vmem>>, vector<1x128xf32>
    %8 = vector.broadcast %7 : vector<1x128xf32> to vector<8x128xf32>
    %9 = arith.mulf %6, %8 : vector<8x128xf32>
    %10 = arith.addf %5, %9 : vector<8x128xf32>
    %11 = vector.extract_strided_slice %1 {offsets = [0, 0], sizes = [8, 127], strides = [1, 1]} : vector<8x128xf32> to vector<8x127xf32>
    %12 = vector.extract_strided_slice %1 {offsets = [0, 1], sizes = [8, 127], strides = [1, 1]} : vector<8x128xf32> to vector<8x127xf32>
    %13 = arith.subf %11, %12 : vector<8x127xf32>
    %14 = arith.mulf %13, %13 : vector<8x127xf32>
    %c0_7 = arith.constant 0 : index
    %c0_8 = arith.constant 0 : index
    %15 = vector.load %arg5[%c0_7, %c0_8] : memref<1x127xf32, #tpu.memory_space<vmem>>, vector<1x127xf32>
    %16 = vector.broadcast %15 : vector<1x127xf32> to vector<8x127xf32>
    %17 = arith.mulf %14, %16 : vector<8x127xf32>
    %c0_9 = arith.constant 0 : index
    %c0_10 = arith.constant 0 : index
    %18 = vector.load %arg6[%c0_9, %c0_10] : memref<128x8xf32, #tpu.memory_space<vmem>>, vector<128x8xf32>
    %cst = arith.constant dense<0.000000e+00> : vector<8x8xf32>
    %19 = tpu.matmul %10, %18, %cst {dimension_numbers = #tpu.dot_dimension_numbers<[1], [0], [0], [1], [0, 0, 1, 1], [], []>, precision = #tpu.contract_precision<fp32>} : vector<8x128xf32>, vector<128x8xf32>, vector<8x8xf32> -> vector<8x8xf32>
    %c0_11 = arith.constant 0 : index
    %c0_12 = arith.constant 0 : index
    %20 = vector.load %arg7[%c0_11, %c0_12] : memref<127x8xf32, #tpu.memory_space<vmem>>, vector<127x8xf32>
    %cst_13 = arith.constant dense<0.000000e+00> : vector<8x8xf32>
    %21 = tpu.matmul %17, %20, %cst_13 {dimension_numbers = #tpu.dot_dimension_numbers<[1], [0], [0], [1], [0, 0, 1, 1], [], []>, precision = #tpu.contract_precision<fp32>} : vector<8x127xf32>, vector<127x8xf32>, vector<8x8xf32> -> vector<8x8xf32>
    %22 = arith.addf %19, %21 : vector<8x8xf32>
    %c0_14 = arith.constant 0 : index
    %c0_15 = arith.constant 0 : index
    %23 = vector.load %arg8[%c0_14, %c0_15] : memref<8x8xf32, #tpu.memory_space<vmem>>, vector<8x8xf32>
    tpu.vector_store %arg8[%c0_14, %c0_15], %22 {strides = array<i32>} : memref<8x8xf32, #tpu.memory_space<vmem>>, vector<8x8xf32>,
    return
  }
  func.func @transform_0(%arg0: i32) -> (i32, i32) {
    %c0_i32 = arith.constant 0 : i32
    %c0_i32_0 = arith.constant 0 : i32
    return %arg0, %c0_i32 : i32, i32
  }
  func.func @transform_1(%arg0: i32) -> (i32, i32) {
    %c0_i32 = arith.constant 0 : i32
    %c0_i32_0 = arith.constant 0 : i32
    return %arg0, %c0_i32 : i32, i32
  }
  func.func @transform_2(%arg0: i32) -> (i32, i32) {
    %c0_i32 = arith.constant 0 : i32
    %c0_i32_0 = arith.constant 0 : i32
    %c0_i32_1 = arith.constant 0 : i32
    return %c0_i32, %c0_i32_0 : i32, i32
  }
  func.func @transform_3(%arg0: i32) -> (i32, i32) {
    %c0_i32 = arith.constant 0 : i32
    %c0_i32_0 = arith.constant 0 : i32
    %c0_i32_1 = arith.constant 0 : i32
    return %c0_i32, %c0_i32_0 : i32, i32
  }
  func.func @transform_4(%arg0: i32) -> (i32, i32) {
    %c0_i32 = arith.constant 0 : i32
    %c0_i32_0 = arith.constant 0 : i32
    %c0_i32_1 = arith.constant 0 : i32
    return %c0_i32, %c0_i32_0 : i32, i32
  }
  func.func @transform_5(%arg0: i32) -> (i32, i32) {
    %c0_i32 = arith.constant 0 : i32
    %c0_i32_0 = arith.constant 0 : i32
    %c0_i32_1 = arith.constant 0 : i32
    return %c0_i32, %c0_i32_0 : i32, i32
  }
  func.func @transform_6(%arg0: i32) -> (i32, i32) {
    %c0_i32 = arith.constant 0 : i32
    %c0_i32_0 = arith.constant 0 : i32
    %c0_i32_1 = arith.constant 0 : i32
    return %c0_i32, %c0_i32_0 : i32, i32
  }
  func.func @transform_7(%arg0: i32) -> (i32, i32) {
    %c0_i32 = arith.constant 0 : i32
    %c0_i32_0 = arith.constant 0 : i32
    return %arg0, %c0_i32 : i32, i32
  }
}

</mosaic_0001>

<bundles_post_ra>
// kernel: tpu_custom_call.1
= control target key start
LH: loop header
LB: loop body
LE: loop exit
PB: predicated region body
PF: predicated region fallthrough
CT: control target
= control target key end

     0   :  { %vm89_vm0 = vcmask 1046528   ;;  %s824_s26 = smov 127   ;;  %s1481_s0 = inlined_call_operand.vmem [shape: f32[8,128], index: 0, kind: input, shape index: {}]   ;;  %s1482_s1 = inlined_call_operand.vmem [shape: f32[8,128], index: 1, kind: input, shape index: {}]   ;;  %s1483_s2 = inlined_call_operand.vmem [shape: f32[1,128], index: 2, kind: input, shape index: {}]   ;;  %s1484_s3 = inlined_call_operand.vmem [shape: f32[1,128], index: 3, kind: input, shape index: {}]   ;;  %s1485_s4 = inlined_call_operand.vmem [shape: f32[1,127], index: 4, kind: input, shape index: {}]   ;;  %s1486_s5 = inlined_call_operand.vmem [shape: f32[128,8], index: 5, kind: input, shape index: {}]   ;;  %s1487_s6 = inlined_call_operand.vmem [shape: f32[127,8], index: 6, kind: input, shape index: {}]   ;;  %s1488_s7 = inlined_call_operand.hbm [shape: f32[8,8], index: 7, kind: output, shape index: {}]  }
   0x1   :  { %v869_v0 = vld [vmem:[%s1482_s1] sm:$0xff]  ;;  %v84_v1 = vld [vmem:[%s1487_s6 + $0x78] sm:$0x7f]  ;;  %v83_v2 = vld [vmem:[%s1487_s6 + $0x70] sm:$0xff] }
   0x2   :  { %43 = vrot.lane.b32.xlu0 %v869_v0, %s824_s26  ;;  %v82_v3 = vld [vmem:[%s1487_s6 + $0x68] sm:$0xff]  ;;  %v91_v4 = vsel %vm89_vm0, %v84_v1, 0  ;;  %v881_v5 = vand.u32 4294901760, %v83_v2  ;;  %v81_v6 = vld [vmem:[%s1487_s6 + $0x60] sm:$0xff]  ;;  %v80_v7 = vld [vmem:[%s1487_s6 + $0x58] sm:$0xff] }
   0x3   :  { %v79_v8 = vld [vmem:[%s1487_s6 + $0x50] sm:$0xff]  ;;  %v892_v9 = vand.u32 4294901760, %v91_v4  ;;  %v894_v10 = vand.u32 4294901760, %v82_v3  ;;  %v896_v11 = vand.u32 4294901760, %v81_v6  ;;  %v898_v12 = vand.u32 4294901760, %v80_v7  ;;  %v78_v13 = vld [vmem:[%s1487_s6 + $0x48] sm:$0xff] }
   0x4   :  { %v904_v14 = vsub.f32 %v83_v2, %v881_v5  ;;  %v906_v15 = vand.u32 4294901760, %v79_v8  ;;  %v908_v16 = vand.u32 4294901760, %v78_v13  ;;  %v77_v17 = vld [vmem:[%s1487_s6 + $0x40] sm:$0xff] }
   0x5   :  { %v914_v18 = vsub.f32 %v91_v4, %v892_v9  ;;  %94 = vmatpush.msra.mxu0 %v892_v9  ;;  %290 = vmatpush.msra.mxu3 %v892_v9  ;;  %v919_v19 = vsub.f32 %v82_v3, %v894_v10  ;;  %v922_v20 = vsub.f32 %v81_v6, %v896_v11 }
   0x6   :  { %v142_v21 = vand.u32 4294901760, %v904_v14  ;;  %v926_v22 = vsub.f32 %v80_v7, %v898_v12  ;;  %v929_v23 = vsub.f32 %v79_v8, %v906_v15 }
   0x7   :  { %12 = vsyncpa [#allocation3], 0  ;;  %237 = vmatpush.msra.mxu2 %v914_v18  ;;  %v136_v24 = vand.u32 4294901760, %v914_v18  ;;  %96 = vmatpush.msra.mxu0 %v881_v5  ;;  %v1501_v25 = vand.u32 4294901760, %v919_v19  ;;  %v1500_v26 = vand.u32 4294901760, %v922_v20  ;;  %v936_v27 = vand.u32 4294901760, %v77_v17 }
   0x8   :  { %v143_v28 = vsub.f32 %v904_v14, %v142_v21  ;;  %292 = vmatpush.msra.mxu3 %v881_v5  ;;  %v943_v29 = vsub.f32 %v78_v13, %v908_v16  ;;  %v1497_v32 = vand.u32 4294901760, %v926_v22  ;;  %v76_v33 = vld [vmem:[%s1487_s6 + $0x38] sm:$0xff]  ;;  %v1495_v34 = vand.u32 4294901760, %v929_v23  ;;  %v75_v35 = vld [vmem:[%s1487_s6 + $0x30] sm:$0xff]  ;;  %v74_v36 = vld [vmem:[%s1487_s6 + $0x28] sm:$0xff]  ;;  %s784_s24 = sshll.u32 %s1488_s7, 4  ;;  %s785_s24 = int_to_ptr.hbm [resolvable:$true] %s784_s24 }
   0x9   :  { %v137_v30 = vsub.f32 %v914_v18, %v136_v24  ;;  %240 = vmatpush.msra.mxu2 %v904_v14  ;;  %98 = vmatpush.msra.mxu0 %v894_v10  ;;  %v149_v31 = vsub.f32 %v919_v19, %v1501_v25  ;;  %v155_v39 = vsub.f32 %v922_v20, %v1500_v26  ;;  %v73_v41 = vld [vmem:[%s1487_s6 + $0x20] sm:$0xff]  ;;  %v978_v43 = vand.u32 4294901760, %v76_v33  ;;  %v72_v48 = vld [vmem:[%s1487_s6 + $0x18] sm:$0xff]  ;;  %v71_v55 = vld [vmem:[%s1487_s6 + $0x10] sm:$0xff] }
   0xa   :  { %294 = vmatpush.msra.mxu3 %v894_v10  ;;  %v144_v38 = vand.u32 4294901760, %v143_v28  ;;  %v971_v40 = vsub.f32 %v77_v17, %v936_v27  ;;  %v1494_v42 = vand.u32 4294901760, %v943_v29  ;;  %v161_v45 = vsub.f32 %v926_v22, %v1497_v32  ;;  %v70_v61 = vld [vmem:[%s1487_s6 + $0x8] sm:$0xff]  ;;  %v68_v62 = vld [vmem:[%s1486_s5 + $0x78] sm:$0xff]  ;;  %v69_v6 = vld [vmem:[%s1487_s6] sm:$0xff] }
   0xb   :  { %v138_v37 = vand.u32 4294901760, %v137_v30  ;;  %243 = vmatpush.msra.mxu2 %v919_v19  ;;  %100 = vmatpush.msra.mxu0 %v896_v11  ;;  %v150_v44 = vand.u32 4294901760, %v149_v31  ;;  %v984_v46 = vand.u32 4294901760, %v75_v35  ;;  %v986_v47 = vand.u32 4294901760, %v74_v36  ;;  %v67_v7 = vld [vmem:[%s1486_s5 + $0x70] sm:$0xff]  ;;  %v66_v28 = vld [vmem:[%s1486_s5 + $0x68] sm:$0xff] }
   0xc   :  { %296 = vmatpush.msra.mxu3 %v896_v11  ;;  %v994_v49 = vsub.f32 %v76_v33, %v978_v43  ;;  %v996_v50 = vand.u32 4294901760, %v73_v41  ;;  %v156_v51 = vand.u32 4294901760, %v155_v39  ;;  %v167_v52 = vsub.f32 %v929_v23, %v1495_v34  ;;  %v65_v39 = vld [vmem:[%s1486_s5 + $0x60] sm:$0xff] }
   0xd   :  { %139 = vmatpush.msra.mxu1 %v138_v37  ;;  %246 = vmatpush.msra.mxu2 %v922_v20  ;;  %v1493_v53 = vand.u32 4294901760, %v971_v40  ;;  %v1004_v54 = vsub.f32 %v75_v35, %v984_v46  ;;  %v1011_v56 = vand.u32 4294901760, %v72_v48  ;;  %v162_v57 = vand.u32 4294901760, %v161_v45 }
   0xe   :  { %102 = vmatpush.msra.mxu0 %v898_v12  ;;  %298 = vmatpush.msra.mxu3 %v898_v12  ;;  %v173_v58 = vsub.f32 %v943_v29, %v1494_v42  ;;  %v1491_v59 = vand.u32 4294901760, %v994_v49  ;;  %v1019_v60 = vsub.f32 %v74_v36, %v986_v47  ;;  %v1030_v63 = vsub.f32 %v73_v41, %v996_v50 }
   0xf   :  { %145 = vmatpush.msra.mxu1 %v144_v38  ;;  %249 = vmatpush.msra.mxu2 %v926_v22  ;;  %v1032_v1 = vand.u32 4294901760, %v71_v55  ;;  %v168_v2 = vand.u32 4294901760, %v167_v52  ;;  %v179_v3 = vsub.f32 %v971_v40, %v1493_v53  ;;  %v1490_v4 = vand.u32 4294901760, %v1004_v54 }
  0x10   :  { %104 = vmatpush.msra.mxu0 %v906_v15  ;;  %300 = vmatpush.msra.mxu3 %v906_v15  ;;  %v1048_v8 = vsub.f32 %v72_v48, %v1011_v56  ;;  %v1050_v13 = vand.u32 4294901760, %v70_v61  ;;  %v1052_v17 = vand.u32 4294901760, %v68_v62  ;;  %v174_v30 = vand.u32 4294901760, %v173_v58 }
  0x11   :  { %151 = vmatpush.msra.mxu1 %v150_v44  ;;  %252 = vmatpush.msra.mxu2 %v929_v23  ;;  %v185_v31 = vsub.f32 %v994_v49, %v1491_v59  ;;  %v1489_v33 = vand.u32 4294901760, %v1019_v60  ;;  %v1492_v35 = vand.u32 4294901760, %v1030_v63  ;;  %v1066_v36 = vsub.f32 %v71_v55, %v1032_v1  ;;  %v64_v55 = vld [vmem:[%s1486_s5 + $0x58] sm:$0xff] }
  0x12   :  { %106 = vmatpush.msra.mxu0 %v908_v16  ;;  %302 = vmatpush.msra.mxu3 %v908_v16  ;;  %v1068_v37 = vand.u32 4294901760, %v69_v6  ;;  %v1070_v38 = vand.u32 4294901760, %v67_v7  ;;  %v180_v41 = vand.u32 4294901760, %v179_v3  ;;  %v191_v44 = vsub.f32 %v1004_v54, %v1490_v4 }
  0x13   :  { %157 = vmatpush.msra.mxu1 %v156_v51  ;;  %255 = vmatpush.msra.mxu2 %v943_v29  ;;  %v1080_v45 = vsub.f32 %v68_v62, %v1052_v17  ;;  %v1082_v48 = vand.u32 4294901760, %v66_v28  ;;  %v1496_v51 = vand.u32 4294901760, %v1048_v8  ;;  %v1088_v52 = vsub.f32 %v70_v61, %v1050_v13 }
  0x14   :  { %108 = vmatpush.msra.mxu0 %v936_v27  ;;  %304 = vmatpush.msra.mxu3 %v936_v27  ;;  %v197_v58 = vsub.f32 %v1019_v60, %v1489_v33  ;;  %v1098_v62 = vsub.f32 %v67_v7, %v1070_v38  ;;  %v203_v61 = vsub.f32 %v1030_v63, %v1492_v35  ;;  %v1498_v3 = vand.u32 4294901760, %v1066_v36  ;;  %v63_v7 = vld [vmem:[%s1486_s5 + $0x50] sm:$0xff] }
  0x15   :  { %163 = vmatpush.msra.mxu1 %v162_v57  ;;  %258 = vmatpush.msra.mxu2 %v971_v40  ;;  %v186_v57 = vand.u32 4294901760, %v185_v31  ;;  %v192_v31 = vand.u32 4294901760, %v191_v44  ;;  %v1499_v33 = vand.u32 4294901760, %v1080_v45  ;;  %v1117_v4 = vsub.f32 %v66_v28, %v1082_v48  ;;  %v62_v44 = vld [vmem:[%s1486_s5 + $0x48] sm:$0xff] }
  0x16   :  { %110 = vmatpush.msra.mxu0 %v978_v43  ;;  %306 = vmatpush.msra.mxu3 %v978_v43  ;;  %v1119_v59 = vand.u32 4294901760, %v64_v55  ;;  %v198_v35 = vand.u32 4294901760, %v197_v58  ;;  %v1502_v28 = vand.u32 4294901760, %v1098_v62  ;;  %v1135_v42 = vand.u32 4294901760, %v63_v7 }
  0x17   :  { %169 = vmatpush.msra.mxu1 %v168_v2  ;;  %261 = vmatpush.msra.mxu2 %v994_v49  ;;  %v1100_v2 = vand.u32 4294901760, %v65_v39  ;;  %v204_v34 = vand.u32 4294901760, %v203_v61  ;;  %v1504_v58 = vand.u32 4294901760, %v1117_v4  ;;  %v1151_v32 = vand.u32 4294901760, %v62_v44 }
  0x18   :  { %112 = vmatpush.msra.mxu0 %v984_v46  ;;  %308 = vmatpush.msra.mxu3 %v984_v46  ;;  %v1149_v61 = vsub.f32 %v64_v55, %v1119_v59  ;;  %v1164_v26 = vsub.f32 %v63_v7, %v1135_v42  ;;  %vm85_vm1 = vcmask 1039360   ;;  %vm775_vm2 = vcmask 64512  }
  0x19   :  { %175 = vmatpush.msra.mxu1 %v174_v30  ;;  %264 = vmatpush.msra.mxu2 %v1004_v54  ;;  %v1109_v30 = vsub.f32 %v69_v6, %v1068_v37  ;;  %v209_v6 = vsub.f32 %v1048_v8, %v1496_v51  ;;  %v1133_v53 = vsub.f32 %v65_v39, %v1100_v2 }
  0x1a   :  { %114 = vmatpush.msra.mxu0 %v986_v47  ;;  %310 = vmatpush.msra.mxu3 %v986_v47  ;;  %v215_v51 = vsub.f32 %v1066_v36, %v1498_v3  ;;  %v478_v39 = vsub.f32 %v1080_v45, %v1499_v33  ;;  %v484_v33 = vsub.f32 %v1098_v62, %v1502_v28  ;;  %v501_v7 = vand.u32 4294901760, %v1149_v61 }
  0x1b   :  { %181 = vmatpush.msra.mxu1 %v180_v41  ;;  %267 = vmatpush.msra.mxu2 %v1019_v60  ;;  %v1503_v41 = vand.u32 4294901760, %v1088_v52  ;;  %v210_v3 = vand.u32 4294901760, %v209_v6  ;;  %v495_v55 = vand.u32 4294901760, %v1133_v53  ;;  %v490_v28 = vsub.f32 %v1117_v4, %v1504_v58 }
  0x1c   :  { %116 = vmatpush.msra.mxu0 %v996_v50  ;;  %312 = vmatpush.msra.mxu3 %v996_v50  ;;  %v216_v25 = vand.u32 4294901760, %v215_v51  ;;  %v479_v6 = vand.u32 4294901760, %v478_v39  ;;  %v1177_v51 = vsub.f32 %v62_v44, %v1151_v32  ;;  %v507_v58 = vand.u32 4294901760, %v1164_v26 }
  0x1d   :  { %187 = vmatpush.msra.mxu1 %v186_v57  ;;  %270 = vmatpush.msra.mxu2 %v1030_v63  ;;  %v1505_v57 = vand.u32 4294901760, %v1109_v30  ;;  %v496_v39 = vsub.f32 %v1133_v53, %v495_v55 }
  0x1e   :  { %118 = vmatpush.msra.mxu0 %v1011_v56  ;;  %314 = vmatpush.msra.mxu3 %v1011_v56  ;;  %v508_v18 = vsub.f32 %v1164_v26, %v507_v58 }
  0x1f   :  { %193 = vmatpush.msra.mxu1 %v192_v31  ;;  %273 = vmatpush.msra.mxu2 %v1048_v8  ;;  %v221_v31 = vsub.f32 %v1088_v52, %v1503_v41 }
  0x20   :  { %120 = vmatpush.msra.mxu0 %v1032_v1  ;;  %316 = vmatpush.msra.mxu3 %v1032_v1 }
  0x21   :  { %199 = vmatpush.msra.mxu1 %v198_v35  ;;  %276 = vmatpush.msra.mxu2 %v1066_v36  ;;  %v227_v35 = vsub.f32 %v1109_v30, %v1505_v57  ;;  %v222_v41 = vand.u32 4294901760, %v221_v31  ;;  %v491_v57 = vand.u32 4294901760, %v490_v28  ;;  %v497_v31 = vand.u32 4294901760, %v496_v39  ;;  %v61_v28 = vld [vmem:[%s1486_s5 + $0x40] sm:$0xff] }
  0x22   :  { %122 = vmatpush.msra.mxu0 %v1050_v13  ;;  %318 = vmatpush.msra.mxu3 %v1050_v13 }
  0x23   :  { %205 = vmatpush.msra.mxu1 %v204_v34  ;;  %279 = vmatpush.msra.mxu2 %v1088_v52  ;;  %v485_v34 = vand.u32 4294901760, %v484_v33  ;;  %v228_v44 = vand.u32 4294901760, %v227_v35  ;;  %v513_v33 = vand.u32 4294901760, %v1177_v51 }
  0x24   :  { %124 = vmatpush.msra.mxu0 %v1068_v37  ;;  %320 = vmatpush.msra.mxu3 %v1068_v37 }
  0x25   :  { %211 = vmatpush.msra.mxu1 %v210_v3  ;;  %282 = vmatpush.msra.mxu2 %v1109_v30  ;;  %v502_v3 = vsub.f32 %v1149_v61, %v501_v7  ;;  %v514_v14 = vsub.f32 %v1177_v51, %v513_v33 }
  0x26   :  { %331 = vmatpush.msrb.mxu0 %v136_v24  ;;  %480 = vmatpush.msrb.mxu3 %v479_v6  ;;  %v1506_v24 = vand.u32 4294901760, %v919_v19  ;;  %v1508_v19 = vand.u32 4294901760, %v926_v22  ;;  %v1510_v22 = vand.u32 4294901760, %v943_v29  ;;  %v1514_v29 = vand.u32 4294901760, %v1019_v60  ;;  %v58_v60 = vld [vmem:[%s1486_s5 + $0x28] sm:$0xff]  ;;  %v56_v6 = vld [vmem:[%s1486_s5 + $0x18] sm:$0xff] }
  0x27   :  { %435 = vmatpush.msrb.mxu2 %v1052_v17  ;;  %217 = vmatpush.msra.mxu1 %v216_v25  ;;  %v503_v25 = vand.u32 4294901760, %v502_v3 }
  0x28   :  { %335 = vmatpush.msrb.mxu0 %v142_v21  ;;  %486 = vmatpush.msrb.mxu3 %v485_v34  ;;  %v1507_v21 = vand.u32 4294901760, %v922_v20  ;;  %v1509_v20 = vand.u32 4294901760, %v929_v23  ;;  %v1512_v23 = vand.u32 4294901760, %v994_v49  ;;  %v59_v49 = vld [vmem:[%s1486_s5 + $0x30] sm:$0xff] }
  0x29   :  { %437 = vmatpush.msrb.mxu2 %v1070_v38  ;;  %223 = vmatpush.msra.mxu1 %v222_v41  ;;  %v509_v41 = vand.u32 4294901760, %v508_v18  ;;  %v55_v18 = vld [vmem:[%s1486_s5 + $0x10] sm:$0xff] }
  0x2a   :  { %339 = vmatpush.msrb.mxu0 %v1506_v24  ;;  %492 = vmatpush.msrb.mxu3 %v491_v57 }
  0x2b   :  { %439 = vmatpush.msrb.mxu2 %v1082_v48  ;;  %229 = vmatpush.msra.mxu1 %v228_v44  ;;  %v1308_v44 = vand.u32 4294901760, %v56_v6 }
  0x2c   :  { %343 = vmatpush.msrb.mxu0 %v1507_v21  ;;  %498 = vmatpush.msrb.mxu3 %v497_v31 }
  0x2d   :  { %398 = vmatpush.msrb.mxu1 %v892_v9  ;;  %441 = vmatpush.msrb.mxu2 %v1100_v2  ;;  %v515_v9 = vand.u32 4294901760, %v514_v14  ;;  %v1319_v14 = vand.u32 4294901760, %v55_v18  ;;  %v1322_v21 = vsub.f32 %v56_v6, %v1308_v44 }
  0x2e   :  { %347 = vmatpush.msrb.mxu0 %v1508_v19  ;;  %504 = vmatpush.msrb.mxu3 %v503_v25  ;;  %v54_v19 = vld [vmem:[%s1486_s5 + $0x8] sm:$0xff] }
  0x2f   :  { %400 = vmatpush.msrb.mxu1 %v881_v5  ;;  %443 = vmatpush.msrb.mxu2 %v1119_v59  ;;  %v1222_v5 = vand.u32 4294901760, %v61_v28 }
  0x30   :  { %351 = vmatpush.msrb.mxu0 %v1509_v20  ;;  %510 = vmatpush.msrb.mxu3 %v509_v41  ;;  %v1335_v20 = vand.u32 4294901760, %v54_v19 }
  0x31   :  { %402 = vmatpush.msrb.mxu1 %v894_v10  ;;  %445 = vmatpush.msrb.mxu2 %v1135_v42  ;;  %v1511_v10 = vand.u32 4294901760, %v971_v40  ;;  %v1519_v40 = vand.u32 4294901760, %v1109_v30 }
  0x32   :  { %355 = vmatpush.msrb.mxu0 %v1510_v22  ;;  %516 = vmatpush.msrb.mxu3 %v515_v9  ;;  %v549_v9 = vand.u32 4294901760, %v1322_v21 }
  0x33   :  { %404 = vmatpush.msrb.mxu1 %v896_v11  ;;  %447 = vmatpush.msrb.mxu2 %v1151_v32  ;;  %v1513_v11 = vand.u32 4294901760, %v1004_v54  ;;  %v1270_v54 = vand.u32 4294901760, %v59_v49 }
  0x34   :  { %359 = vmatpush.msrb.mxu0 %v1511_v10  ;;  %v1338_v10 = vsub.f32 %v55_v18, %v1319_v14  ;;  %v795_v18 = vld [vmem:[%s1483_s2] ss:$0 sm:$0xff]  ;;  %s825_s2 = smov [#allocation2]  }
  0x35   :  { %406 = vmatpush.msrb.mxu1 %v898_v12  ;;  %449 = vmatpush.msrb.mxu2 %v1222_v5  ;;  %v1515_v12 = vand.u32 4294901760, %v1030_v63 }
  0x36   :  { %363 = vmatpush.msrb.mxu0 %v1512_v23  ;;  %v53_v23 = vld [vmem:[%s1486_s5] sm:$0xff] }
  0x37   :  { %408 = vmatpush.msrb.mxu1 %v906_v15  ;;  %v1516_v15 = vand.u32 4294901760, %v1048_v8  ;;  %v1283_v8 = vand.u32 4294901760, %v58_v60 }
  0x38   :  { %367 = vmatpush.msrb.mxu0 %v1513_v11 }
  0x39   :  { %410 = vmatpush.msrb.mxu1 %v908_v16  ;;  %v1517_v16 = vand.u32 4294901760, %v1066_v36  ;;  %v57_v36 = vld [vmem:[%s1486_s5 + $0x20] sm:$0xff]  ;;  %v1299_v35 = vsub.f32 %v58_v60, %v1283_v8 }
  0x3a   :  { %371 = vmatpush.msrb.mxu0 %v1514_v29  ;;  %v1296_v57 = vand.u32 4294901760, %v57_v36  ;;  %v550_v29 = vsub.f32 %v1322_v21, %v549_v9 }
  0x3b   :  { %412 = vmatpush.msrb.mxu1 %v936_v27  ;;  %v1518_v27 = vand.u32 4294901760, %v1088_v52  ;;  %v537_v31 = vand.u32 4294901760, %v1299_v35 }
  0x3c   :  { %375 = vmatpush.msrb.mxu0 %v1515_v12  ;;  %v1311_v3 = vsub.f32 %v57_v36, %v1296_v57  ;;  %v1347_v12 = vand.u32 4294901760, %v53_v23 }
  0x3d   :  { %414 = vmatpush.msrb.mxu1 %v978_v43  ;;  %v60_v43 = vld [vmem:[%s1486_s5 + $0x38] sm:$0xff]  ;;  %v538_v41 = vsub.f32 %v1299_v35, %v537_v31 }
  0x3e   :  { %379 = vmatpush.msrb.mxu0 %v1516_v15  ;;  %v543_v25 = vand.u32 4294901760, %v1311_v3  ;;  %v1350_v15 = vsub.f32 %v54_v19, %v1335_v20 }
  0x3f   :  { %416 = vmatpush.msrb.mxu1 %v984_v46  ;;  %v1260_v46 = vand.u32 4294901760, %v60_v43  ;;  %v539_v22 = vand.u32 4294901760, %v538_v41  ;;  %v796_v41 = vld [vmem:[%s1484_s3] ss:$0 sm:$0xff]  ;;  %s782_s3 = sshll.u32 %s825_s2, 4  ;;  %s783_s3 = int_to_ptr.vmem [resolvable:$true] %s782_s3 }
  0x40   :  { %383 = vmatpush.msrb.mxu0 %v1517_v16  ;;  %v555_v16 = vand.u32 4294901760, %v1338_v10 }
  0x41   :  { %418 = vmatpush.msrb.mxu1 %v986_v47  ;;  %v1263_v47 = vsub.f32 %v61_v28, %v1222_v5  ;;  %451 = vmatpush.msrb.mxu2 %v1260_v46  ;;  %v544_v28 = vsub.f32 %v1311_v3, %v543_v25 }
  0x42   :  { %387 = vmatpush.msrb.mxu0 %v1518_v27  ;;  %v551_v27 = vand.u32 4294901760, %v550_v29 }
  0x43   :  { %420 = vmatpush.msrb.mxu1 %v996_v50  ;;  %v519_v50 = vand.u32 4294901760, %v1263_v47  ;;  %453 = vmatpush.msrb.mxu2 %v1270_v54  ;;  %v545_v11 = vand.u32 4294901760, %v544_v28 }
  0x44   :  { %391 = vmatpush.msrb.mxu0 %v1519_v40  ;;  %v561_v40 = vand.u32 4294901760, %v1350_v15 }
  0x45   :  { %422 = vmatpush.msrb.mxu1 %v1011_v56  ;;  %v1273_v56 = vsub.f32 %v60_v43, %v1260_v46  ;;  %v520_v63 = vsub.f32 %v1263_v47, %v519_v50  ;;  %455 = vmatpush.msrb.mxu2 %v1283_v8  ;;  %v1356_v43 = vsub.f32 %v53_v23, %v1347_v12 }
  0x46   :  { %v562_v60 = vsub.f32 %v1350_v15, %v561_v40 }
  0x47   :  { %424 = vmatpush.msrb.mxu1 %v1032_v1  ;;  %v525_v1 = vand.u32 4294901760, %v1273_v56  ;;  %457 = vmatpush.msrb.mxu2 %v1296_v57 }
  0x49   :  { %426 = vmatpush.msrb.mxu1 %v1050_v13  ;;  %v1286_v13 = vsub.f32 %v59_v49, %v1270_v54  ;;  %v526_v52 = vsub.f32 %v1273_v56, %v525_v1  ;;  %459 = vmatpush.msrb.mxu2 %v1308_v44  ;;  %v556_v49 = vsub.f32 %v1338_v10, %v555_v16 }
  0x4b   :  { %428 = vmatpush.msrb.mxu1 %v1068_v37  ;;  %v521_v37 = vand.u32 4294901760, %v520_v63  ;;  %v531_v30 = vand.u32 4294901760, %v1286_v13  ;;  %v527_v34 = vand.u32 4294901760, %v526_v52  ;;  %461 = vmatpush.msrb.mxu2 %v1319_v14  ;;  %v567_v63 = vand.u32 4294901760, %v1356_v43 }
  0x4c   :  { %v557_v36 = vand.u32 4294901760, %v556_v49 }
  0x4d   :  { %522 = vmatpush.msrb.mxu3 %v521_v37  ;;  %v532_v39 = vsub.f32 %v1286_v13, %v531_v30  ;;  %463 = vmatpush.msrb.mxu2 %v1335_v20  ;;  %v563_v37 = vand.u32 4294901760, %v562_v60  ;;  %v568_v52 = vsub.f32 %v1356_v43, %v567_v63 }
  0x4f   :  { %528 = vmatpush.msrb.mxu3 %v527_v34  ;;  %v533_v24 = vand.u32 4294901760, %v532_v39  ;;  %465 = vmatpush.msrb.mxu2 %v1347_v12  ;;  %v569_v6 = vand.u32 4294901760, %v568_v52  ;;  %v27_v34 = vld [vmem:[%s1481_s0] sm:$0xff] }
  0x50   :  { %v29_v39 = vmul.f32 %v27_v34, %v27_v34 }
  0x51   :  { %534 = vmatpush.msrb.mxu3 %v533_v24  ;;  %v35_v24 = vmul.f32 %v869_v0, %v869_v0 }
  0x52   :  { %v34_v19 = vmul.f32 %v795_v18, %v29_v39  ;;  %v1520_v18 = vand.u32 4294901760, %v1080_v45 }
  0x53   :  { %540 = vmatpush.msrb.mxu3 %v539_v22  ;;  %v40_v28 = vmul.f32 %v796_v41, %v35_v24  ;;  %v1521_v41 = vand.u32 4294901760, %v1098_v62 }
  0x55   :  { %546 = vmatpush.msrb.mxu3 %v545_v11  ;;  %v41_v22 = vadd.f32 %v40_v28, %v34_v19 }
  0x57   :  { %552 = vmatpush.msrb.mxu3 %v551_v27  ;;  %v1379_v23 = vand.u32 4294901760, %v41_v22  ;;  %v797_v27 = vld [vmem:[%s1485_s4] ss:$0 sm:$0xff] }
  0x59   :  { %558 = vmatpush.msrb.mxu3 %v557_v36  ;;  %v1386_v60 = vsub.f32 %v41_v22, %v1379_v23  ;;  %v1522_v22 = vand.u32 4294901760, %v1117_v4 }
  0x5b   :  { %564 = vmatpush.msrb.mxu3 %v563_v37 }
  0x5d   :  { %570 = vmatpush.msrb.mxu3 %v569_v6  ;;  %v468_v6 = vand.u32 4294901760, %v1386_v60 }
  0x5f   :  { %v469_v39 = vsub.f32 %v1386_v60, %v468_v6 }
  0x61   :  { %v470_v28 = vand.u32 4294901760, %v469_v39 }
  0x74   :  { %v44_v11 = vpop.permute.xlu0 %43 }
  0x75   :  { %v46_v29 = vsub.f32 %v869_v0, %v44_v11 }
  0x77   :  { %v47_v49 = vmul.f32 %v46_v29, %v46_v29 }
  0x79   :  { %v52_v36 = vmul.f32 %v797_v27, %v47_v49 }
  0x7b   :  { %v87_v37 = vsel %vm85_vm1, %v52_v36, 0 }
  0x7c   :  { %v125_v52 = vand.u32 4294901760, %v87_v37 }
  0x7e   :  { %231 = vmatmul.f32.vlgmr.msra.gmra.mxu1 %v125_v52  ;;  %v126_v34 = vsub.f32 %v87_v37, %v125_v52 }
  0x7f   :  { %631 = vmatpush.msra.mxu1 %v1052_v17 }
  0x80   :  { %285 = vmatmul.f32.vlgmr.msra.gmra.mxu2 %v126_v34  ;;  %v127_v0 = vand.u32 4294901760, %v126_v34 }
  0x81   :  { %672 = vmatpush.msra.mxu2 %v1520_v18  ;;  %633 = vmatpush.msra.mxu1 %v1070_v38 }
  0x82   :  { %324 = vmatmul.f32.vlgmr.msra.gmra.mxu3 %v127_v0  ;;  %v128_v24 = vsub.f32 %v126_v34, %v127_v0 }
  0x83   :  { %676 = vmatpush.msra.mxu2 %v1521_v41  ;;  %739 = vmatpush.msra.mxu3 %v1052_v17 }
  0x84   :  { %v129_v19 = vand.u32 4294901760, %v128_v24  ;;  %635 = vmatpush.msra.mxu1 %v1082_v48 }
  0x85   :  { %680 = vmatpush.msra.mxu2 %v1522_v22  ;;  %741 = vmatpush.msra.mxu3 %v1070_v38 }
  0x86   :  { %130 = vmatmul.f32.vlgmr.msra.gmra.mxu0 %v129_v19  ;;  %430 = vmatmul.f32.vlgmr.msrb.gmra.mxu1 %v125_v52 }
  0x87   :  { %578 = vmatpush.msra.mxu0 %v1080_v45  ;;  %684 = vmatpush.msra.mxu2 %v495_v55 }
  0x88   :  { %743 = vmatpush.msra.mxu3 %v1082_v48  ;;  %471 = vmatmul.f32.vlgmr.msrb.gmra.mxu2 %v470_v28 }
  0x89   :  { %581 = vmatpush.msra.mxu0 %v1098_v62  ;;  %688 = vmatpush.msra.mxu2 %v501_v7 }
  0x8a   :  { %745 = vmatpush.msra.mxu3 %v1100_v2  ;;  %637 = vmatpush.msra.mxu1 %v1100_v2 }
  0x8b   :  { %584 = vmatpush.msra.mxu0 %v1117_v4  ;;  %572 = vmatmul.f32.vlgmr.msrb.gmra.mxu3 %v1379_v23 }
  0x8c   :  { %692 = vmatpush.msra.mxu2 %v507_v58  ;;  %747 = vmatpush.msra.mxu3 %v1119_v59 }
  0x8d   :  { %587 = vmatpush.msra.mxu0 %v1133_v53  ;;  %639 = vmatpush.msra.mxu1 %v1119_v59 }
  0x8e   :  { %393 = vmatmul.f32.vlgmr.msrb.gmra.mxu0 %v125_v52  ;;  %696 = vmatpush.msra.mxu2 %v513_v33 }
  0x8f   :  { %590 = vmatpush.msra.mxu0 %v1149_v61  ;;  %749 = vmatpush.msra.mxu3 %v1135_v42 }
  0x90   :  { %641 = vmatpush.msra.mxu1 %v1135_v42  ;;  %700 = vmatpush.msra.mxu2 %v519_v50 }
  0x91   :  { %593 = vmatpush.msra.mxu0 %v1164_v26  ;;  %751 = vmatpush.msra.mxu3 %v1151_v32 }
  0x92   :  { %643 = vmatpush.msra.mxu1 %v1151_v32  ;;  %704 = vmatpush.msra.mxu2 %v525_v1 }
  0x93   :  { %596 = vmatpush.msra.mxu0 %v1177_v51  ;;  %753 = vmatpush.msra.mxu3 %v1222_v5 }
  0x94   :  { %645 = vmatpush.msra.mxu1 %v1222_v5  ;;  %708 = vmatpush.msra.mxu2 %v531_v30 }
  0x95   :  { %599 = vmatpush.msra.mxu0 %v1263_v47  ;;  %755 = vmatpush.msra.mxu3 %v1260_v46 }
  0x96   :  { %647 = vmatpush.msra.mxu1 %v1260_v46  ;;  %712 = vmatpush.msra.mxu2 %v537_v31 }
  0x97   :  { %602 = vmatpush.msra.mxu0 %v1273_v56  ;;  %757 = vmatpush.msra.mxu3 %v1270_v54 }
  0x98   :  { %649 = vmatpush.msra.mxu1 %v1270_v54  ;;  %716 = vmatpush.msra.mxu2 %v543_v25 }
  0x99   :  { %605 = vmatpush.msra.mxu0 %v1286_v13  ;;  %759 = vmatpush.msra.mxu3 %v1283_v8 }
  0x9a   :  { %651 = vmatpush.msra.mxu1 %v1283_v8  ;;  %720 = vmatpush.msra.mxu2 %v549_v9 }
  0x9b   :  { %608 = vmatpush.msra.mxu0 %v1299_v35  ;;  %761 = vmatpush.msra.mxu3 %v1296_v57 }
  0x9c   :  { %653 = vmatpush.msra.mxu1 %v1296_v57  ;;  %724 = vmatpush.msra.mxu2 %v555_v16 }
  0x9d   :  { %611 = vmatpush.msra.mxu0 %v1311_v3  ;;  %763 = vmatpush.msra.mxu3 %v1308_v44 }
  0x9e   :  { %655 = vmatpush.msra.mxu1 %v1308_v44  ;;  %728 = vmatpush.msra.mxu2 %v561_v40 }
  0x9f   :  { %614 = vmatpush.msra.mxu0 %v1322_v21  ;;  %765 = vmatpush.msra.mxu3 %v1319_v14 }
  0xa0   :  { %657 = vmatpush.msra.mxu1 %v1319_v14  ;;  %732 = vmatpush.msra.mxu2 %v567_v63 }
  0xa1   :  { %617 = vmatpush.msra.mxu0 %v1338_v10  ;;  %767 = vmatpush.msra.mxu3 %v1335_v20 }
  0xa2   :  { %734 = vmatmul.f32.vlgmr.msra.gmra.mxu2 %v1379_v23  ;;  %659 = vmatpush.msra.mxu1 %v1335_v20 }
  0xa3   :  { %620 = vmatpush.msra.mxu0 %v1350_v15  ;;  %769 = vmatpush.msra.mxu3 %v1347_v12 }
  0xa4   :  { %771 = vmatmul.f32.vlgmr.msra.gmra.mxu3 %v1379_v23  ;;  %661 = vmatpush.msra.mxu1 %v1347_v12 }
  0xa5   :  { %623 = vmatpush.msra.mxu0 %v1356_v43  ;;  %665 = vmatmul.f32.vlgmr.msra.gmra.mxu1 %v468_v6 }
  0xa6   :  { %626 = vmatmul.f32.vlgmr.msra.gmra.mxu0 %v1386_v60 }
  0xfb   :  { %v232_v32 = vpop.f32.mrf.mxu1 }
 0x103   :  { %v131_v26 = vpop.f32.mrf.mxu0  ;;  %v286_v53 = vpop.f32.mrf.mxu2 }
 0x104   :  { %v233_v42 = vadd.f32 %v232_v32, %v131_v26  ;;  %v431_v48 = vpop.f32.mrf.mxu1 }
 0x105   :  { %v325_v4 = vpop.f32.mrf.mxu3 }
 0x106   :  { %v287_v59 = vadd.f32 %v286_v53, %v233_v42 }
 0x108   :  { %v326_v38 = vadd.f32 %v325_v4, %v287_v59 }
 0x10b   :  { %v394_v17 = vpop.f32.mrf.mxu0  ;;  %v472_v2 = vpop.f32.mrf.mxu2 }
 0x10c   :  { %v395_v45 = vadd.f32 %v394_v17, %v326_v38 }
 0x10e   :  { %v432_v62 = vadd.f32 %v431_v48, %v395_v45  ;;  %v573_v61 = vpop.f32.mrf.mxu3 }
 0x110   :  { %v473_v58 = vadd.f32 %v472_v2, %v432_v62 }
 0x112   :  { %v574_v55 = vadd.f32 %v573_v61, %v473_v58 }
 0x122   :  { %v666_v51 = vpop.f32.mrf.mxu1 }
 0x123   :  { %v627_v7 = vpop.f32.mrf.mxu0 }
 0x124   :  { %v628_v33 = vadd.f32 %v627_v7, %v574_v55 }
 0x125   :  { %v735_v5 = vpop.f32.mrf.mxu2 }
 0x126   :  { %v667_v46 = vadd.f32 %v666_v51, %v628_v33 }
 0x127   :  { %v772_v47 = vpop.f32.mrf.mxu3 }
 0x128   :  { %v736_v50 = vadd.f32 %v735_v5, %v667_v46 }
 0x12a   :  { %v773_v54 = vadd.f32 %v772_v47, %v736_v50 }
 0x12c   :  { %776 = vst.msk [vmem:[#allocation2] sm:$0xff] %vm775_vm2, %v773_v54 }
 0x12d   :  { %787 = dma.vmem_to_hbm [thread:$0]  %s783_s3, 128, %s785_s24, [#allocation3]  }
 0x12e   :  { %822 = dma.done.wait [#allocation3], 128  }
 0x12f   :  { %823 = vsyncadd [#allocation3], 4294967168 }
 0x130   :  { %792 = vsyncpa [#allocation3], 1 }

</bundles_post_ra>
